<compile_context>
chip_gen: v5e
topology: v5e:2x2
jax: 0.10.0
libtpu: 0.0.40
codegen_flags: <defaults>
</compile_context>

<pallas_src>
import jax
import jax.numpy as jnp
from jax.experimental import pallas as pl
from jax.experimental.pallas import tpu as pltpu


def generator_kernel(x_ref, w1_ref, b1_ref, w2_ref, b2_ref, o_ref):
    # Cast the activation tile to the weight dtype inside VMEM (free on the
    # VPU) so the MXU runs in bf16 when the weights are bf16.
    x = x_ref[...].astype(w1_ref.dtype)
    # First linear layer on the MXU, f32 accumulation (K = 100, Mosaic pads).
    h = jnp.dot(x, w1_ref[...], preferred_element_type=jnp.float32)
    h = jnp.maximum(h + b1_ref[...], 0.0)          # bias + ReLU in f32 (VPU)
    # Second linear layer; feed h in the weight dtype straight into the MXU.
    y = jnp.dot(h.astype(w2_ref.dtype), w2_ref[...],
                preferred_element_type=jnp.float32)
    o_ref[...] = jnp.tanh(y + b2_ref[...]).astype(o_ref.dtype)  # Tanh on EUP


def _round_up(n, m):
    return (n + m - 1) // m * m


def prepare_params(w1, b1, w2, b2, *, param_dtype=jnp.bfloat16):
    """One-time weight prep: layout (in, out), bf16 weights, f32 biases."""
    hidden = w1.shape[1]
    img_dim = w2.shape[1]
    w1p = jnp.asarray(w1, param_dtype)
    w2p = jnp.asarray(w2, param_dtype)
    b1p = jnp.asarray(b1, jnp.float32).reshape(1, hidden)   # biases stay f32
    b2p = jnp.asarray(b2, jnp.float32).reshape(1, img_dim)
    return w1p, b1p, w2p, b2p


def generator_forward(x, params, *, block_b=1024, out_dtype=jnp.float32):
    """x: (B, z_dim) f32 -> (B, img_dim).  params from prepare_params()."""
    w1p, b1p, w2p, b2p = params
    B, z_dim = x.shape
    hidden = w1p.shape[1]
    img_dim = w2p.shape[1]

    # Batch tile: multiple of 8 sublanes; for small B split across >=2 grid
    # steps so both v7x TensorCores get work; cap by block_b for VMEM.
    tb = max(8, min(block_b, _round_up(pl.cdiv(B, 2), 8)))
    grid = (pl.cdiv(B, tb),)

    return pl.pallas_call(
        generator_kernel,
        out_shape=jax.ShapeDtypeStruct((B, img_dim), out_dtype),
        grid=grid,
        in_specs=[
            pl.BlockSpec((tb, z_dim), lambda i: (i, 0)),       # x tile
            pl.BlockSpec((z_dim, hidden), lambda i: (0, 0)),   # w1 (resident)
            pl.BlockSpec((1, hidden), lambda i: (0, 0)),       # b1 (resident)
            pl.BlockSpec((hidden, img_dim), lambda i: (0, 0)), # w2 (resident)
            pl.BlockSpec((1, img_dim), lambda i: (0, 0)),      # b2 (resident)
        ],
        out_specs=pl.BlockSpec((tb, img_dim), lambda i: (i, 0)),
        compiler_params=pltpu.CompilerParams(
            dimension_semantics=("parallel",)),                # v7x: 2 TCs
    )(x, w1p, b1p, w2p, b2p)


def init_params(key, z_dim=100, hidden=128, img_dim=28 * 28):
    """Deterministic init mimicking nn.Linear default (uniform +-1/sqrt(fan_in))."""
    k1, k2, k3, k4 = jax.random.split(key, 4)
    bound1 = 1.0 / jnp.sqrt(z_dim)
    bound2 = 1.0 / jnp.sqrt(hidden)
    # Stored as (in_features, out_features) so the kernel is x @ W + b.
    w1 = jax.random.uniform(k1, (z_dim, hidden), jnp.float32, -bound1, bound1)
    b1 = jax.random.uniform(k2, (1, hidden), jnp.float32, -bound1, bound1)
    w2 = jax.random.uniform(k3, (hidden, img_dim), jnp.float32, -bound2, bound2)
    b2 = jax.random.uniform(k4, (1, img_dim), jnp.float32, -bound2, bound2)
    return w1, b1, w2, b2


def _reference(x, w1, b1, w2, b2):
    return jnp.tanh(jnp.maximum(x @ w1 + b1, 0.0) @ w2 + b2)


if __name__ == "__main__":
    key = jax.random.PRNGKey(0)
    kx, kp, kb = jax.random.split(key, 3)

    z_dim, hidden, img_dim = 100, 128, 28 * 28
    w1, b1, w2, b2 = init_params(kp, z_dim, hidden, img_dim)

    # One-time weight prep (hoisted out of the forward path).
    params_f32 = prepare_params(w1, b1, w2, b2, param_dtype=jnp.float32)
    params_bf16 = prepare_params(w1, b1, w2, b2)           # default bf16

    # ---- Small-batch case from the module spec (B=2), f32 MXU path ----------
    B = 2
    x = jax.random.normal(kx, (B, z_dim), jnp.float32)
    out = jax.block_until_ready(generator_forward(x, params_f32))
    ref = _reference(x, w1, b1, w2, b2)
    assert out.shape == (B, img_dim)
    assert jnp.allclose(out, ref, atol=1e-5, rtol=1e-5)

    # ---- Batched case exercising the grid (non-multiple of the tile) --------
    Bb = 300
    xb = jax.random.normal(kb, (Bb, z_dim), jnp.float32)
    out_b = jax.block_until_ready(
        generator_forward(xb, params_f32, block_b=128))
    ref_b = _reference(xb, w1, b1, w2, b2)
    assert out_b.shape == (Bb, img_dim)
    assert jnp.allclose(out_b, ref_b, atol=1e-5, rtol=1e-5)

    # ---- Default bf16 MXU operands (f32 accumulation); looser tolerance -----
    out_bf16 = jax.block_until_ready(generator_forward(xb, params_bf16))
    assert out_bf16.shape == (Bb, img_dim)
    assert jnp.allclose(out_bf16, ref_b, atol=2e-2, rtol=2e-2)

    print("KERNEL_OK")
</pallas_src>

<mosaic_0001>
module attributes {stable_mosaic.version = 11 : i64} {
  func.func @generator_kernel(%arg0: i32, %arg1: memref<8x100xf32, #tpu.memory_space<vmem>>, %arg2: memref<100x128xf32, #tpu.memory_space<vmem>>, %arg3: memref<1x128xf32, #tpu.memory_space<vmem>>, %arg4: memref<128x784xf32, #tpu.memory_space<vmem>>, %arg5: memref<1x784xf32, #tpu.memory_space<vmem>>, %arg6: memref<8x784xf32, #tpu.memory_space<vmem>>) attributes {dimension_semantics = [#tpu.dimension_semantics<parallel>], iteration_bounds = array<i64: 1>, scalar_prefetch = 0 : i64, scratch_operands = 0 : i64, tpu.core_type = #tpu.core_type<tc>, window_params = [{transform_indices = @transform_0, window_bounds = array<i64: 8, 100>}, {pipeline_mode = #tpu.pipeline_mode<synchronous>, transform_indices = @transform_1, window_bounds = array<i64: 100, 128>}, {pipeline_mode = #tpu.pipeline_mode<synchronous>, transform_indices = @transform_2, window_bounds = array<i64: 1, 128>}, {pipeline_mode = #tpu.pipeline_mode<synchronous>, transform_indices = @transform_3, window_bounds = array<i64: 128, 784>}, {pipeline_mode = #tpu.pipeline_mode<synchronous>, transform_indices = @transform_4, window_bounds = array<i64: 1, 784>}, {transform_indices = @transform_5, window_bounds = array<i64: 8, 784>}]} {
    %c0 = arith.constant 0 : index
    %c0_0 = arith.constant 0 : index
    %0 = vector.load %arg1[%c0, %c0_0] : memref<8x100xf32, #tpu.memory_space<vmem>>, vector<8x100xf32>
    %c0_1 = arith.constant 0 : index
    %c0_2 = arith.constant 0 : index
    %1 = vector.load %arg2[%c0_1, %c0_2] : memref<100x128xf32, #tpu.memory_space<vmem>>, vector<100x128xf32>
    %cst = arith.constant dense<0.000000e+00> : vector<8x128xf32>
    %2 = tpu.matmul %0, %1, %cst {dimension_numbers = #tpu.dot_dimension_numbers<[1], [0], [0], [1], [0, 0, 1, 1], [], []>} : vector<8x100xf32>, vector<100x128xf32>, vector<8x128xf32> -> vector<8x128xf32>
    %c0_3 = arith.constant 0 : index
    %c0_4 = arith.constant 0 : index
    %3 = vector.load %arg3[%c0_3, %c0_4] : memref<1x128xf32, #tpu.memory_space<vmem>>, vector<1x128xf32>
    %4 = vector.broadcast %3 : vector<1x128xf32> to vector<8x128xf32>
    %5 = arith.addf %2, %4 : vector<8x128xf32>
    %cst_5 = arith.constant 0.000000e+00 : f32
    %6 = vector.broadcast %cst_5 : f32 to vector<8x128xf32>
    %7 = arith.maximumf %5, %6 : vector<8x128xf32>
    %c0_6 = arith.constant 0 : index
    %c0_7 = arith.constant 0 : index
    %8 = vector.load %arg4[%c0_6, %c0_7] : memref<128x784xf32, #tpu.memory_space<vmem>>, vector<128x784xf32>
    %cst_8 = arith.constant dense<0.000000e+00> : vector<8x784xf32>
    %9 = tpu.matmul %7, %8, %cst_8 {dimension_numbers = #tpu.dot_dimension_numbers<[1], [0], [0], [1], [0, 0, 1, 1], [], []>} : vector<8x128xf32>, vector<128x784xf32>, vector<8x784xf32> -> vector<8x784xf32>
    %c0_9 = arith.constant 0 : index
    %c0_10 = arith.constant 0 : index
    %10 = vector.load %arg5[%c0_9, %c0_10] : memref<1x784xf32, #tpu.memory_space<vmem>>, vector<1x784xf32>
    %11 = vector.broadcast %10 : vector<1x784xf32> to vector<8x784xf32>
    %12 = arith.addf %9, %11 : vector<8x784xf32>
    %13 = math.tanh %12 : vector<8x784xf32>
    %c0_11 = arith.constant 0 : index
    %c0_12 = arith.constant 0 : index
    %14 = vector.load %arg6[%c0_11, %c0_12] : memref<8x784xf32, #tpu.memory_space<vmem>>, vector<8x784xf32>
    tpu.vector_store %arg6[%c0_11, %c0_12], %13 {strides = array<i32>} : memref<8x784xf32, #tpu.memory_space<vmem>>, vector<8x784xf32>,
    return
  }
  func.func @transform_0(%arg0: i32) -> (i32, i32) {
    %c0_i32 = arith.constant 0 : i32
    %c0_i32_0 = arith.constant 0 : i32
    return %arg0, %c0_i32 : i32, i32
  }
  func.func @transform_1(%arg0: i32) -> (i32, i32) {
    %c0_i32 = arith.constant 0 : i32
    %c0_i32_0 = arith.constant 0 : i32
    %c0_i32_1 = arith.constant 0 : i32
    return %c0_i32, %c0_i32_0 : i32, i32
  }
  func.func @transform_2(%arg0: i32) -> (i32, i32) {
    %c0_i32 = arith.constant 0 : i32
    %c0_i32_0 = arith.constant 0 : i32
    %c0_i32_1 = arith.constant 0 : i32
    return %c0_i32, %c0_i32_0 : i32, i32
  }
  func.func @transform_3(%arg0: i32) -> (i32, i32) {
    %c0_i32 = arith.constant 0 : i32
    %c0_i32_0 = arith.constant 0 : i32
    %c0_i32_1 = arith.constant 0 : i32
    return %c0_i32, %c0_i32_0 : i32, i32
  }
  func.func @transform_4(%arg0: i32) -> (i32, i32) {
    %c0_i32 = arith.constant 0 : i32
    %c0_i32_0 = arith.constant 0 : i32
    %c0_i32_1 = arith.constant 0 : i32
    return %c0_i32, %c0_i32_0 : i32, i32
  }
  func.func @transform_5(%arg0: i32) -> (i32, i32) {
    %c0_i32 = arith.constant 0 : i32
    %c0_i32_0 = arith.constant 0 : i32
    return %arg0, %c0_i32 : i32, i32
  }
}

</mosaic_0001>

<bundles_post_ra>
// kernel: tpu_custom_call.1
= control target key start
LH: loop header
LB: loop body
LE: loop exit
PB: predicated region body
PF: predicated region fallthrough
CT: control target
= control target key end

     0   :  { %10 = vsyncpa [#allocation3], 0  ;;  %vm43_vm0 = vcmask 1043456   ;;  %vm39_vm1 = vcmask 818176   ;;  %vm355_vm2 = vcmask 1041408   ;;  %vm357_vm3 = vcmask 1045508   ;;  %s912_s0 = inlined_call_operand.vmem [shape: f32[2,100], index: 0, kind: input, shape index: {}]   ;;  %s913_s1 = inlined_call_operand.vmem [shape: f32[100,128], index: 1, kind: input, shape index: {}]   ;;  %s914_s2 = inlined_call_operand.vmem [shape: f32[1,128], index: 2, kind: input, shape index: {}]   ;;  %s915_s3 = inlined_call_operand.vmem [shape: f32[128,784], index: 3, kind: input, shape index: {}]   ;;  %s916_s4 = inlined_call_operand.vmem [shape: f32[1,784], index: 4, kind: input, shape index: {}]   ;;  %s917_s5 = inlined_call_operand.hbm [shape: f32[2,784], index: 5, kind: output, shape index: {}]  }
   0x1   :  { %v34_v0 = vld [vmem:[%s913_s1 + $0x60] sm:$0xf]  ;;  %v33_v1 = vld [vmem:[%s913_s1 + $0x58] sm:$0xff]  ;;  %v32_v2 = vld [vmem:[%s913_s1 + $0x50] sm:$0xff]  ;;  %vm362_vm4 = vcmask 1043458   ;;  %vm364_vm5 = vcmask 1045504  }
   0x2   :  { %423 = vmatpush.msk.msra.mxu0 %vm43_vm0, %v34_v0  ;;  %v31_v3 = vld [vmem:[%s913_s1 + $0x48] sm:$0xff]  ;;  %v30_v4 = vld [vmem:[%s913_s1 + $0x40] sm:$0xff]  ;;  %v174_v6 = vld [vmem:[%s915_s3 + $0x350] sm:$0xff]  ;;  %vm366_vm6 = vcmask 1045506   ;;  %vm396_vm8 = vcmask 128004  }
   0x3   :  { %v173_v5 = vld [vmem:[%s915_s3 + $0x348] sm:$0xff]  ;;  %v175_v7 = vld [vmem:[%s915_s3 + $0x358] sm:$0xff]  ;;  %216 = vmatpush.msra.mxu2 %v174_v6  ;;  %v166_v8 = vld [vmem:[%s915_s3 + $0x310] sm:$0xff] }
   0x4   :  { %51 = vmatpush.msra.mxu0 %v33_v1  ;;  %196 = vmatpush.msra.mxu1 %v173_v5  ;;  %v167_v9 = vld [vmem:[%s915_s3 + $0x318] sm:$0xff]  ;;  %v168_v10 = vld [vmem:[%s915_s3 + $0x320] sm:$0xff]  ;;  %v161_v14 = vld [vmem:[%s915_s3 + $0x2e8] sm:$0xff] }
   0x5   :  { %236 = vmatpush.msra.mxu3 %v175_v7  ;;  %v159_v11 = vld [vmem:[%s915_s3 + $0x2d8] sm:$0xff]  ;;  %v160_v12 = vld [vmem:[%s915_s3 + $0x2e0] sm:$0xff]  ;;  %217 = vmatpush.msra.mxu2 %v167_v9  ;;  %v153_v16 = vld [vmem:[%s915_s3 + $0x2a8] sm:$0xff] }
   0x6   :  { %52 = vmatpush.msra.mxu0 %v32_v2  ;;  %v29_v13 = vld [vmem:[%s913_s1 + $0x38] sm:$0xff]  ;;  %197 = vmatpush.msra.mxu1 %v166_v8  ;;  %v152_v15 = vld [vmem:[%s915_s3 + $0x2a0] sm:$0xff]  ;;  %v28_v17 = vld [vmem:[%s913_s1 + $0x30] sm:$0xff] }
   0x7   :  { %237 = vmatpush.msra.mxu3 %v168_v10  ;;  %218 = vmatpush.msra.mxu2 %v160_v12  ;;  %v154_v18 = vld [vmem:[%s915_s3 + $0x2b0] sm:$0xff]  ;;  %v145_v19 = vld [vmem:[%s915_s3 + $0x268] sm:$0xff]  ;;  %v147_v22 = vld [vmem:[%s915_s3 + $0x278] sm:$0xff] }
   0x8   :  { %53 = vmatpush.msra.mxu0 %v31_v3  ;;  %198 = vmatpush.msra.mxu1 %v159_v11  ;;  %v146_v20 = vld [vmem:[%s915_s3 + $0x270] sm:$0xff]  ;;  %v27_v21 = vld [vmem:[%s913_s1 + $0x28] sm:$0xff]  ;;  %v139_v24 = vld [vmem:[%s915_s3 + $0x238] sm:$0xff] }
   0x9   :  { %238 = vmatpush.msra.mxu3 %v161_v14  ;;  %219 = vmatpush.msra.mxu2 %v153_v16  ;;  %v138_v23 = vld [vmem:[%s915_s3 + $0x230] sm:$0xff]  ;;  %v26_v25 = vld [vmem:[%s913_s1 + $0x20] sm:$0xff]  ;;  %v131_v27 = vld [vmem:[%s915_s3 + $0x1f8] sm:$0xff] }
   0xa   :  { %54 = vmatpush.msra.mxu0 %v30_v4  ;;  %199 = vmatpush.msra.mxu1 %v152_v15  ;;  %v140_v26 = vld [vmem:[%s915_s3 + $0x240] sm:$0xff]  ;;  %v25_v29 = vld [vmem:[%s913_s1 + $0x18] sm:$0xff]  ;;  %v133_v30 = vld [vmem:[%s915_s3 + $0x208] sm:$0xff] }
   0xb   :  { %239 = vmatpush.msra.mxu3 %v154_v18  ;;  %220 = vmatpush.msra.mxu2 %v146_v20  ;;  %v132_v28 = vld [vmem:[%s915_s3 + $0x200] sm:$0xff]  ;;  %v125_v32 = vld [vmem:[%s915_s3 + $0x1c8] sm:$0xff]  ;;  %v24_v33 = vld [vmem:[%s913_s1 + $0x10] sm:$0xff] }
   0xc   :  { %55 = vmatpush.msra.mxu0 %v29_v13  ;;  %200 = vmatpush.msra.mxu1 %v145_v19  ;;  %v124_v31 = vld [vmem:[%s915_s3 + $0x1c0] sm:$0xff]  ;;  %v126_v34 = vld [vmem:[%s915_s3 + $0x1d0] sm:$0xff]  ;;  %v117_v35 = vld [vmem:[%s915_s3 + $0x188] sm:$0xff] }
   0xd   :  { %240 = vmatpush.msra.mxu3 %v147_v22  ;;  %221 = vmatpush.msra.mxu2 %v139_v24  ;;  %v118_v36 = vld [vmem:[%s915_s3 + $0x190] sm:$0xff]  ;;  %v23_v37 = vld [vmem:[%s913_s1 + $0x8] sm:$0xff]  ;;  %v119_v38 = vld [vmem:[%s915_s3 + $0x198] sm:$0xff] }
   0xe   :  { %56 = vmatpush.msra.mxu0 %v28_v17  ;;  %201 = vmatpush.msra.mxu1 %v138_v23  ;;  %v110_v39 = vld [vmem:[%s915_s3 + $0x150] sm:$0xff]  ;;  %v111_v40 = vld [vmem:[%s915_s3 + $0x158] sm:$0xff]  ;;  %v22_v41 = vld [vmem:[%s913_s1] sm:$0xff] }
   0xf   :  { %241 = vmatpush.msra.mxu3 %v140_v26  ;;  %222 = vmatpush.msra.mxu2 %v132_v28  ;;  %v112_v42 = vld [vmem:[%s915_s3 + $0x160] sm:$0xff]  ;;  %v103_v44 = vld [vmem:[%s915_s3 + $0x118] sm:$0xff]  ;;  %v105_v46 = vld [vmem:[%s915_s3 + $0x128] sm:$0xff] }
  0x10   :  { %57 = vmatpush.msra.mxu0 %v27_v21  ;;  %202 = vmatpush.msra.mxu1 %v131_v27  ;;  %v21_v43 = vld [vmem:[%s912_s0] sm:$0xff]  ;;  %v97_v49 = vld [vmem:[%s915_s3 + $0xe8] sm:$0xff]  ;;  %v98_v50 = vld [vmem:[%s915_s3 + $0xf0] sm:$0xff] }
  0x11   :  { %242 = vmatpush.msra.mxu3 %v133_v30  ;;  %223 = vmatpush.msra.mxu2 %v125_v32  ;;  %v104_v45 = vld [vmem:[%s915_s3 + $0x120] sm:$0xff]  ;;  %v89_v51 = vld [vmem:[%s915_s3 + $0xa8] sm:$0xff]  ;;  %v90_v53 = vld [vmem:[%s915_s3 + $0xb0] sm:$0xff] }
  0x12   :  { %58 = vmatpush.msra.mxu0 %v26_v25  ;;  %203 = vmatpush.msra.mxu1 %v124_v31  ;;  %v96_v47 = vld [vmem:[%s915_s3 + $0xe0] sm:$0xff]  ;;  %v169_v52 = vld [vmem:[%s915_s3 + $0x328] sm:$0xff]  ;;  %v91_v54 = vld [vmem:[%s915_s3 + $0xb8] sm:$0xff] }
  0x13   :  { %243 = vmatpush.msra.mxu3 %v126_v34  ;;  %224 = vmatpush.msra.mxu2 %v118_v36  ;;  %v176_v48 = vld [vmem:[%s915_s3 + $0x360] sm:$0xff]  ;;  %v82_v55 = vld [vmem:[%s915_s3 + $0x70] sm:$0xff]  ;;  %v83_v57 = vld [vmem:[%s915_s3 + $0x78] sm:$0xff] }
  0x14   :  { %59 = vmatpush.msra.mxu0 %v25_v29  ;;  %204 = vmatpush.msra.mxu1 %v117_v35  ;;  %v162_v56 = vld [vmem:[%s915_s3 + $0x2f0] sm:$0xff]  ;;  %v84_v58 = vld [vmem:[%s915_s3 + $0x80] sm:$0xff]  ;;  %v75_v59 = vld [vmem:[%s915_s3 + $0x38] sm:$0xff] }
  0x15   :  { %244 = vmatpush.msra.mxu3 %v119_v38  ;;  %225 = vmatpush.msra.mxu2 %v111_v40  ;;  %v155_v60 = vld [vmem:[%s915_s3 + $0x2b8] sm:$0xff]  ;;  %v76_v61 = vld [vmem:[%s915_s3 + $0x40] sm:$0xff]  ;;  %v77_v62 = vld [vmem:[%s915_s3 + $0x48] sm:$0xff] }
  0x16   :  { %60 = vmatpush.msra.mxu0 %v24_v33  ;;  %205 = vmatpush.msra.mxu1 %v110_v39  ;;  %v68_v63 = vld [vmem:[%s915_s3] sm:$0xff]  ;;  %v69_v1 = vld [vmem:[%s915_s3 + $0x8] sm:$0xff]  ;;  %v70_v2 = vld [vmem:[%s915_s3 + $0x10] sm:$0xff] }
  0x17   :  { %245 = vmatpush.msra.mxu3 %v112_v42  ;;  %226 = vmatpush.msra.mxu2 %v104_v45  ;;  %v148_v0 = vld [vmem:[%s915_s3 + $0x280] sm:$0xff]  ;;  %v177_v3 = vld [vmem:[%s915_s3 + $0x368] sm:$0xff]  ;;  %v178_v4 = vld [vmem:[%s915_s3 + $0x370] sm:$0xff] }
  0x18   :  { %61 = vmatpush.msra.mxu0 %v23_v37  ;;  %206 = vmatpush.msra.mxu1 %v103_v44  ;;  %v179_v5 = vld [vmem:[%s915_s3 + $0x378] sm:$0xff]  ;;  %v141_v6 = vld [vmem:[%s915_s3 + $0x248] sm:$0xff]  ;;  %v170_v7 = vld [vmem:[%s915_s3 + $0x330] sm:$0xff] }
  0x19   :  { %246 = vmatpush.msra.mxu3 %v105_v46  ;;  %227 = vmatpush.msra.mxu2 %v97_v49  ;;  %v171_v8 = vld [vmem:[%s915_s3 + $0x338] sm:$0xff]  ;;  %v172_v9 = vld [vmem:[%s915_s3 + $0x340] sm:$0xff]  ;;  %v134_v10 = vld [vmem:[%s915_s3 + $0x210] sm:$0xff] }
  0x1a   :  { %62 = vmatpush.msra.mxu0 %v22_v41  ;;  %207 = vmatpush.msra.mxu1 %v96_v47  ;;  %v163_v11 = vld [vmem:[%s915_s3 + $0x2f8] sm:$0xff]  ;;  %v164_v12 = vld [vmem:[%s915_s3 + $0x300] sm:$0xff]  ;;  %v165_v13 = vld [vmem:[%s915_s3 + $0x308] sm:$0xff] }
  0x1b   :  { %424 = vmatmul.msk.f32.vlgmr.msra.gmra.mxu0 %vm39_vm1, %v21_v43  ;;  %247 = vmatpush.msra.mxu3 %v98_v50  ;;  %v127_v14 = vld [vmem:[%s915_s3 + $0x1d8] sm:$0xff]  ;;  %v156_v15 = vld [vmem:[%s915_s3 + $0x2c0] sm:$0xff]  ;;  %v157_v16 = vld [vmem:[%s915_s3 + $0x2c8] sm:$0xff] }
  0x1c   :  { %256 = vmatpush.msrb.mxu0 %v176_v48  ;;  %208 = vmatpush.msra.mxu1 %v89_v51  ;;  %v158_v17 = vld [vmem:[%s915_s3 + $0x2d0] sm:$0xff]  ;;  %v120_v18 = vld [vmem:[%s915_s3 + $0x1a0] sm:$0xff]  ;;  %v149_v19 = vld [vmem:[%s915_s3 + $0x288] sm:$0xff] }
  0x1d   :  { %228 = vmatpush.msra.mxu2 %v90_v53  ;;  %248 = vmatpush.msra.mxu3 %v91_v54  ;;  %v150_v20 = vld [vmem:[%s915_s3 + $0x290] sm:$0xff]  ;;  %v151_v21 = vld [vmem:[%s915_s3 + $0x298] sm:$0xff]  ;;  %v113_v22 = vld [vmem:[%s915_s3 + $0x168] sm:$0xff] }
  0x1e   :  { %257 = vmatpush.msrb.mxu0 %v169_v52  ;;  %209 = vmatpush.msra.mxu1 %v82_v55  ;;  %v142_v23 = vld [vmem:[%s915_s3 + $0x250] sm:$0xff]  ;;  %v143_v24 = vld [vmem:[%s915_s3 + $0x258] sm:$0xff]  ;;  %v144_v25 = vld [vmem:[%s915_s3 + $0x260] sm:$0xff] }
  0x1f   :  { %229 = vmatpush.msra.mxu2 %v83_v57  ;;  %249 = vmatpush.msra.mxu3 %v84_v58  ;;  %v106_v26 = vld [vmem:[%s915_s3 + $0x130] sm:$0xff]  ;;  %v135_v27 = vld [vmem:[%s915_s3 + $0x218] sm:$0xff]  ;;  %v136_v28 = vld [vmem:[%s915_s3 + $0x220] sm:$0xff] }
  0x20   :  { %258 = vmatpush.msrb.mxu0 %v162_v56  ;;  %210 = vmatpush.msra.mxu1 %v75_v59  ;;  %v137_v29 = vld [vmem:[%s915_s3 + $0x228] sm:$0xff]  ;;  %v99_v30 = vld [vmem:[%s915_s3 + $0xf8] sm:$0xff]  ;;  %v128_v31 = vld [vmem:[%s915_s3 + $0x1e0] sm:$0xff] }
  0x21   :  { %230 = vmatpush.msra.mxu2 %v76_v61  ;;  %250 = vmatpush.msra.mxu3 %v77_v62  ;;  %v129_v32 = vld [vmem:[%s915_s3 + $0x1e8] sm:$0xff]  ;;  %v130_v33 = vld [vmem:[%s915_s3 + $0x1f0] sm:$0xff]  ;;  %v92_v34 = vld [vmem:[%s915_s3 + $0xc0] sm:$0xff] }
  0x22   :  { %259 = vmatpush.msrb.mxu0 %v155_v60  ;;  %211 = vmatpush.msra.mxu1 %v68_v63  ;;  %v121_v35 = vld [vmem:[%s915_s3 + $0x1a8] sm:$0xff]  ;;  %v122_v36 = vld [vmem:[%s915_s3 + $0x1b0] sm:$0xff]  ;;  %v123_v37 = vld [vmem:[%s915_s3 + $0x1b8] sm:$0xff] }
  0x23   :  { %231 = vmatpush.msra.mxu2 %v69_v1  ;;  %251 = vmatpush.msra.mxu3 %v70_v2  ;;  %v85_v38 = vld [vmem:[%s915_s3 + $0x88] sm:$0xff]  ;;  %v114_v39 = vld [vmem:[%s915_s3 + $0x170] sm:$0xff]  ;;  %v115_v40 = vld [vmem:[%s915_s3 + $0x178] sm:$0xff] }
  0x24   :  { %260 = vmatpush.msrb.mxu0 %v148_v0  ;;  %276 = vmatpush.msrb.mxu1 %v177_v3  ;;  %v116_v41 = vld [vmem:[%s915_s3 + $0x180] sm:$0xff]  ;;  %v78_v42 = vld [vmem:[%s915_s3 + $0x50] sm:$0xff]  ;;  %v107_v43 = vld [vmem:[%s915_s3 + $0x138] sm:$0xff] }
  0x25   :  { %296 = vmatpush.msrb.mxu2 %v178_v4  ;;  %316 = vmatpush.msrb.mxu3 %v179_v5  ;;  %v108_v44 = vld [vmem:[%s915_s3 + $0x140] sm:$0xff]  ;;  %v109_v45 = vld [vmem:[%s915_s3 + $0x148] sm:$0xff]  ;;  %v71_v46 = vld [vmem:[%s915_s3 + $0x18] sm:$0xff] }
  0x26   :  { %261 = vmatpush.msrb.mxu0 %v141_v6  ;;  %277 = vmatpush.msrb.mxu1 %v170_v7  ;;  %v100_v47 = vld [vmem:[%s915_s3 + $0x100] sm:$0xff]  ;;  %v101_v48 = vld [vmem:[%s915_s3 + $0x108] sm:$0xff]  ;;  %v102_v49 = vld [vmem:[%s915_s3 + $0x110] sm:$0xff] }
  0x27   :  { %297 = vmatpush.msrb.mxu2 %v171_v8  ;;  %317 = vmatpush.msrb.mxu3 %v172_v9  ;;  %v93_v50 = vld [vmem:[%s915_s3 + $0xc8] sm:$0xff]  ;;  %v94_v51 = vld [vmem:[%s915_s3 + $0xd0] sm:$0xff]  ;;  %v95_v52 = vld [vmem:[%s915_s3 + $0xd8] sm:$0xff] }
  0x28   :  { %262 = vmatpush.msrb.mxu0 %v134_v10  ;;  %278 = vmatpush.msrb.mxu1 %v163_v11  ;;  %v86_v53 = vld [vmem:[%s915_s3 + $0x90] sm:$0xff]  ;;  %v87_v54 = vld [vmem:[%s915_s3 + $0x98] sm:$0xff]  ;;  %v88_v55 = vld [vmem:[%s915_s3 + $0xa0] sm:$0xff] }
  0x29   :  { %298 = vmatpush.msrb.mxu2 %v164_v12  ;;  %318 = vmatpush.msrb.mxu3 %v165_v13  ;;  %v79_v56 = vld [vmem:[%s915_s3 + $0x58] sm:$0xff]  ;;  %v80_v57 = vld [vmem:[%s915_s3 + $0x60] sm:$0xff]  ;;  %v81_v58 = vld [vmem:[%s915_s3 + $0x68] sm:$0xff] }
  0x2a   :  { %263 = vmatpush.msrb.mxu0 %v127_v14  ;;  %279 = vmatpush.msrb.mxu1 %v156_v15  ;;  %v72_v59 = vld [vmem:[%s915_s3 + $0x20] sm:$0xff]  ;;  %v73_v60 = vld [vmem:[%s915_s3 + $0x28] sm:$0xff]  ;;  %v74_v61 = vld [vmem:[%s915_s3 + $0x30] sm:$0xff] }
  0x2b   :  { %299 = vmatpush.msrb.mxu2 %v157_v16  ;;  %319 = vmatpush.msrb.mxu3 %v158_v17  ;;  %v428_v62 = vld [vmem:[%s914_s2] ss:$0 sm:$0xff]  ;;  %vm395_vm7 = vmor %vm362_vm4, %vm355_vm2 }
  0x2c   :  { %264 = vmatpush.msrb.mxu0 %v120_v18  ;;  %280 = vmatpush.msrb.mxu1 %v149_v19  ;;  %v180_v2 = vld [vmem:[%s916_s4] sm:$0x7f]  ;;  %vm397_vm9 = vmor %vm396_vm8, %vm395_vm7 }
  0x2d   :  { %300 = vmatpush.msrb.mxu2 %v150_v20  ;;  %320 = vmatpush.msrb.mxu3 %v151_v21  ;;  %v185_v4 = vperm.slane %v180_v2, 3  ;;  %v182_v6 = vperm.slane %v180_v2, 0  ;;  %v183_v7 = vperm.slane %v180_v2, 1  ;;  %v184_v9 = vperm.slane %v180_v2, 2 }
  0x2e   :  { %265 = vmatpush.msrb.mxu0 %v113_v22  ;;  %281 = vmatpush.msrb.mxu1 %v142_v23  ;;  %v186_v15 = vperm.slane %v180_v2, 4  ;;  %v187_v17 = vperm.slane %v180_v2, 5  ;;  %v188_v19 = vperm.slane %v180_v2, 6 }
  0x2f   :  { %301 = vmatpush.msrb.mxu2 %v143_v24  ;;  %321 = vmatpush.msrb.mxu3 %v144_v25 }
  0x30   :  { %266 = vmatpush.msrb.mxu0 %v106_v26  ;;  %282 = vmatpush.msrb.mxu1 %v135_v27 }
  0x31   :  { %302 = vmatpush.msrb.mxu2 %v136_v28  ;;  %322 = vmatpush.msrb.mxu3 %v137_v29 }
  0x32   :  { %267 = vmatpush.msrb.mxu0 %v99_v30  ;;  %283 = vmatpush.msrb.mxu1 %v128_v31 }
  0x33   :  { %303 = vmatpush.msrb.mxu2 %v129_v32  ;;  %323 = vmatpush.msrb.mxu3 %v130_v33 }
  0x34   :  { %268 = vmatpush.msrb.mxu0 %v92_v34  ;;  %284 = vmatpush.msrb.mxu1 %v121_v35 }
  0x35   :  { %304 = vmatpush.msrb.mxu2 %v122_v36  ;;  %324 = vmatpush.msrb.mxu3 %v123_v37 }
  0x36   :  { %269 = vmatpush.msrb.mxu0 %v85_v38  ;;  %285 = vmatpush.msrb.mxu1 %v114_v39 }
  0x37   :  { %305 = vmatpush.msrb.mxu2 %v115_v40  ;;  %325 = vmatpush.msrb.mxu3 %v116_v41 }
  0x38   :  { %270 = vmatpush.msrb.mxu0 %v78_v42  ;;  %286 = vmatpush.msrb.mxu1 %v107_v43 }
  0x39   :  { %306 = vmatpush.msrb.mxu2 %v108_v44  ;;  %326 = vmatpush.msrb.mxu3 %v109_v45 }
  0x3a   :  { %271 = vmatpush.msrb.mxu0 %v71_v46  ;;  %287 = vmatpush.msrb.mxu1 %v100_v47 }
  0x3b   :  { %307 = vmatpush.msrb.mxu2 %v101_v48  ;;  %327 = vmatpush.msrb.mxu3 %v102_v49 }
  0x3c   :  { %288 = vmatpush.msrb.mxu1 %v93_v50 }
  0x3d   :  { %308 = vmatpush.msrb.mxu2 %v94_v51  ;;  %328 = vmatpush.msrb.mxu3 %v95_v52 }
  0x3e   :  { %289 = vmatpush.msrb.mxu1 %v86_v53 }
  0x3f   :  { %309 = vmatpush.msrb.mxu2 %v87_v54  ;;  %329 = vmatpush.msrb.mxu3 %v88_v55 }
  0x40   :  { %290 = vmatpush.msrb.mxu1 %v79_v56 }
  0x41   :  { %310 = vmatpush.msrb.mxu2 %v80_v57  ;;  %330 = vmatpush.msrb.mxu3 %v81_v58 }
  0x42   :  { %291 = vmatpush.msrb.mxu1 %v72_v59 }
  0x43   :  { %311 = vmatpush.msrb.mxu2 %v73_v60  ;;  %331 = vmatpush.msrb.mxu3 %v74_v61 }
  0x98   :  { %v64_v63 = vpop.f32.mrf.mxu0 }
  0x99   :  { %v65_v0 = vadd.f32 %v428_v62, %v64_v63 }
  0x9b   :  { %v67_v1 = vmax.f32 %v65_v0, 0.0 }
  0x9d   :  { %212 = vmatmul.f32.vlgmr.msra.gmra.mxu1 %v67_v1  ;;  %232 = vmatmul.f32.vlgmr.msra.gmra.mxu2 %v67_v1 }
  0x9e   :  { %252 = vmatmul.f32.vlgmr.msra.gmra.mxu3 %v67_v1  ;;  %272 = vmatmul.f32.vlgmr.msrb.gmra.mxu0 %v67_v1 }
  0xa5   :  { %292 = vmatmul.f32.vlgmr.msrb.gmra.mxu1 %v67_v1  ;;  %312 = vmatmul.f32.vlgmr.msrb.gmra.mxu2 %v67_v1 }
  0xa6   :  { %332 = vmatmul.f32.vlgmr.msrb.gmra.mxu3 %v67_v1 }
 0x11a   :  { %v213_v3 = vpop.f32.mrf.mxu1 }
 0x11b   :  { %v273_v5 = vpop.f32.mrf.mxu0  ;;  %v214_v11 = vadd.f32 %v213_v3, %v182_v6 }
 0x11c   :  { %v274_v8 = vadd.f32 %v273_v5, %v185_v4 }
 0x11e   :  { %429 = vtanh.f32 %v274_v8 }
 0x120   :  { %v233_v10 = vpop.f32.mrf.mxu2 }
 0x121   :  { %v234_v12 = vadd.f32 %v233_v10, %v183_v7  ;;  %v253_v13 = vpop.f32.mrf.mxu3 }
 0x122   :  { %v254_v14 = vadd.f32 %v253_v13, %v184_v9  ;;  %v293_v16 = vpop.f32.mrf.mxu1 }
 0x123   :  { %431 = vtanh.f32 %v234_v12  ;;  %v294_v18 = vadd.f32 %v293_v16, %v186_v15 }
 0x124   :  { %433 = vtanh.f32 %v254_v14  ;;  %v430_v20 = vpop.eup %429 }
 0x125   :  { %435 = vtanh.f32 %v214_v11  ;;  %v352_v28 = vrot.slane %v430_v20, 2 }
 0x126   :  { %437 = vtanh.f32 %v294_v18 }
 0x128   :  { %v313_v21 = vpop.f32.mrf.mxu2 }
 0x129   :  { %v432_v22 = vpop.eup %431  ;;  %v314_v23 = vadd.f32 %v313_v21, %v187_v17  ;;  %v333_v24 = vpop.f32.mrf.mxu3 }
 0x12a   :  { %v434_v25 = vpop.eup %433  ;;  %v350_v26 = vrot.slane %v432_v22, 6  ;;  %v334_v30 = vadd.f32 %v333_v24, %v188_v19 }
 0x12b   :  { %v436_v27 = vpop.eup %435  ;;  %v351_v29 = vrot.slane %v434_v25, 4  ;;  %439 = vtanh.f32 %v314_v23 }
 0x12c   :  { %v356_v31 = vsel %vm355_vm2, %v436_v27, %v350_v26  ;;  %v363_v32 = vsel %vm362_vm4, %v436_v27, %v350_v26  ;;  %v372_v33 = vsel %vm357_vm3, %v436_v27, %v350_v26  ;;  %v379_v34 = vsel %vm364_vm5, %v350_v26, %v436_v27  ;;  %v438_v46 = vpop.eup %437 }
 0x12d   :  { %v358_v35 = vsel %vm357_vm3, %v351_v29, %v352_v28  ;;  %v365_v36 = vsel %vm364_vm5, %v352_v28, %v351_v29  ;;  %v373_v37 = vsel %vm355_vm2, %v351_v29, %v352_v28  ;;  %v380_v38 = vsel %vm362_vm4, %v351_v29, %v352_v28 }
 0x12e   :  { %v359_v39 = vsel %vm43_vm0, %v356_v31, %v358_v35  ;;  %v367_v40 = vsel %vm366_vm6, %v363_v32, %v365_v36  ;;  %v374_v41 = vsel %vm43_vm0, %v373_v37, %v372_v33  ;;  %v381_v42 = vsel %vm366_vm6, %v380_v38, %v379_v34 }
 0x12f   :  { %v368_v43 = vrot.slane %v367_v40, 2  ;;  %v375_v44 = vrot.slane %v374_v41, 4  ;;  %v382_v45 = vrot.slane %v381_v42, 6  ;;  %394 = vst [vmem:[#allocation2] sm:$0xff] %v359_v39  ;;  %441 = vtanh.f32 %v334_v30 }
 0x131   :  { %v440_v47 = vpop.eup %439  ;;  %399 = vst [vmem:[#allocation2 + $0xe] sm:$0xff] %v368_v43 }
 0x132   :  { %401 = vst [vmem:[#allocation2 + $0x1c] sm:$0xff] %v375_v44  ;;  %v353_v48 = vrot.slane %v440_v47, 6 }
 0x133   :  { %403 = vst [vmem:[#allocation2 + $0x2a] sm:$0xff] %v382_v45 }
 0x134   :  { %v360_v50 = vsel %vm355_vm2, %v438_v46, %v353_v48  ;;  %v369_v51 = vsel %vm362_vm4, %v438_v46, %v353_v48  ;;  %v376_v52 = vsel %vm357_vm3, %v438_v46, %v353_v48  ;;  %v383_v53 = vsel %vm364_vm5, %v353_v48, %v438_v46 }
 0x135   :  { %v442_v49 = vpop.eup %441 }
 0x136   :  { %v354_v54 = vrot.slane %v442_v49, 4 }
 0x138   :  { %v361_v55 = vsel %vm43_vm0, %v360_v50, %v354_v54  ;;  %v370_v56 = vsel %vm366_vm6, %v369_v51, %v354_v54  ;;  %v377_v57 = vsel %vm43_vm0, %v354_v54, %v376_v52  ;;  %v384_v58 = vsel %vm366_vm6, %v354_v54, %v383_v53 }
 0x139   :  { %v371_v59 = vrot.slane %v370_v56, 2  ;;  %v378_v60 = vrot.slane %v377_v57, 4  ;;  %v385_v61 = vrot.slane %v384_v58, 6  ;;  %398 = vst.msk [vmem:[#allocation2 + $0x8] sm:$0x3f] %vm397_vm9, %v361_v55 }
 0x13b   :  { %400 = vst.msk [vmem:[#allocation2 + $0x16] sm:$0x3f] %vm397_vm9, %v371_v59 }
 0x13c   :  { %402 = vst.msk [vmem:[#allocation2 + $0x24] sm:$0x3f] %vm397_vm9, %v378_v60 }
 0x13d   :  { %404 = vst.msk [vmem:[#allocation2 + $0x32] sm:$0x3f] %vm397_vm9, %v385_v61 }
 0x13e   :  { %408 = vsyncadd [#allocation3], 672  ;;  %s411_s10 = sshll.u32 %s917_s5, 4  ;;  %s469_s11 = smov [#allocation2]   ;;  %s412_s10 = int_to_ptr.hbm [resolvable:$true] %s411_s10 }
 0x13f   :  { %s409_s0 = sshll.u32 %s469_s11, 4  ;;  %s470_s12 = smov 224   ;;  %s410_s0 = int_to_ptr.vmem [resolvable:$true] %s409_s0 }
 0x140   :  { %s471_s13 = smov 14  }
 0x141   :  { %417 = dma.vmem_to_hbm [thread:$0]  %s410_s0, 224, %s412_s10, [#allocation3], %s470_s12, %s470_s12, %s471_s13  }
 0x142   :  { %467 = dma.done.wait [#allocation3], 896  }
 0x143   :  { %468 = vsyncadd [#allocation3], 4294966400 }
 0x144   :  { %422 = vsyncpa [#allocation3], 1 }

</bundles_post_ra>
